<compile_context>
chip_gen: v5e
topology: v5e:2x2
jax: 0.10.0
libtpu: 0.0.40
codegen_flags: <defaults>
</compile_context>

<pallas_src>
import jax
import jax.numpy as jnp
from jax import lax
from jax.experimental import pallas as pl
from jax.experimental.pallas import tpu as pltpu


# Contract dim 1 of lhs with dim 1 of rhs: (m, k) x (n, k) -> (m, n).
# Equivalent to lhs @ rhs.T but without materializing a transpose.
_DN_T = (((1,), (1,)), ((), ()))


def _lora_linear_kernel(x_ref, w_ref, b_ref, a_ref, bup_ref,
                        o_ref, acc_ref, h_ref):
    """One (tm, tn) output tile of  x @ W^T + b + (x @ A_all^T) @ B_all^T,
    accumulated over the K (D_in) grid axis."""
    k = pl.program_id(2)

    @pl.when(k == 0)
    def _init():
        acc_ref[...] = jnp.zeros_like(acc_ref)
        h_ref[...] = jnp.zeros_like(h_ref)

    x = x_ref[...]                                          # (tm, tk) bf16
    # base linear: partial x @ W^T for this K slab (MXU, f32 accumulate)
    acc_ref[...] += lax.dot_general(x, w_ref[...], _DN_T,
                                    preferred_element_type=jnp.float32)
    # fused LoRA down-projection: partial x @ A_all^T (A_all = stacked downs)
    h_ref[...] += lax.dot_general(x, a_ref[...], _DN_T,
                                  preferred_element_type=jnp.float32)

    @pl.when(k == pl.num_programs(2) - 1)
    def _finalize():
        out = acc_ref[...] + b_ref[...]                     # bias once, f32
        # fused LoRA up-projection; per-LoRA scales already folded into B_all
        out = out + lax.dot_general(h_ref[...].astype(bup_ref.dtype),
                                    bup_ref[...], _DN_T,
                                    preferred_element_type=jnp.float32)
        o_ref[...] = out.astype(o_ref.dtype)


def lora_injector_forward(x, w, b, downs, ups, scales, *,
                          tm=128, tn=128, tk=128):
    """x: [B, S, D_in] -> [B, S, D_out] (f32). Hot path runs inside the kernel."""
    B, S, D_in = x.shape
    D_out = w.shape[0]
    L, rank, _ = downs.shape
    LR = L * rank
    N = B * S

    assert N % tm == 0, f"N={N} must be a multiple of tm={tm}"
    assert D_out % tn == 0, f"D_out={D_out} must be a multiple of tn={tn}"
    assert D_in % tk == 0, f"D_in={D_in} must be a multiple of tk={tk}"

    # bf16 weights/activations, f32 accumulation inside the kernel.
    x2d = x.reshape(N, D_in).astype(jnp.bfloat16)
    w_bf = w.astype(jnp.bfloat16)
    b2d = b.reshape(1, D_out).astype(jnp.float32)
    # Fuse all active LoRAs into two matmuls.
    a_all = downs.reshape(LR, D_in).astype(jnp.bfloat16)            # [LR, D_in]
    b_all = jnp.concatenate(                                        # [D_out, LR]
        [scales[i] * ups[i] for i in range(L)], axis=1).astype(jnp.bfloat16)

    grid = (N // tm, D_out // tn, D_in // tk)

    flops = 2 * N * D_out * D_in + 2 * N * LR * D_in + 2 * N * D_out * LR
    bytes_accessed = (x2d.size * 2 + w_bf.size * 2 + a_all.size * 2
                      + b_all.size * 2 + b2d.size * 4 + N * D_out * 4)

    out2d = pl.pallas_call(
        _lora_linear_kernel,
        out_shape=jax.ShapeDtypeStruct((N, D_out), jnp.float32),
        grid_spec=pltpu.PrefetchScalarGridSpec(
            num_scalar_prefetch=0,
            grid=grid,
            in_specs=[
                pl.BlockSpec((tm, tk), lambda i, j, k: (i, k)),     # x rows
                pl.BlockSpec((tn, tk), lambda i, j, k: (j, k)),     # W tile
                pl.BlockSpec((1, tn), lambda i, j, k: (0, j)),      # bias
                pl.BlockSpec((LR, tk), lambda i, j, k: (0, k)),     # A_all
                pl.BlockSpec((tn, LR), lambda i, j, k: (j, 0)),     # B_all
            ],
            out_specs=pl.BlockSpec((tm, tn), lambda i, j, k: (i, j)),
            scratch_shapes=[
                pltpu.VMEM((tm, tn), jnp.float32),   # output accumulator
                pltpu.VMEM((tm, LR), jnp.float32),   # LoRA hidden accumulator
            ]),
        compiler_params=pltpu.CompilerParams(
            dimension_semantics=("parallel", "parallel", "arbitrary")),
        cost_estimate=pl.CostEstimate(flops=flops, transcendentals=0,
                                      bytes_accessed=bytes_accessed),
    )(x2d, w_bf, b2d, a_all, b_all)

    return out2d.reshape(B, S, D_out)


def _reference(x, w, b, downs, ups, scales):
    """Pure-f32 reference matching the PyTorch module semantics."""
    base = jnp.einsum("bsd,od->bso", x, w) + b
    for i in range(downs.shape[0]):
        h = jnp.einsum("bsd,rd->bsr", x, downs[i])
        base = base + scales[i] * jnp.einsum("bsr,or->bso", h, ups[i])
    return base


if __name__ == "__main__":
    # Small transformer-block-like shapes for the Linear org_module.
    batch, seq, d_in, d_out = 2, 128, 256, 256
    rank, num_loras = 4, 2

    key = jax.random.PRNGKey(0)
    k_x, k_w, k_b, k_dn, k_up = jax.random.split(key, 5)

    x = jax.random.normal(k_x, (batch, seq, d_in), dtype=jnp.float32)
    # org nn.Linear parameters
    w = jax.random.normal(k_w, (d_out, d_in), dtype=jnp.float32) * 0.05
    b = jax.random.normal(k_b, (d_out,), dtype=jnp.float32) * 0.01
    # stacked LoRA (LoConModule) params: down [L, r, D_in], up [L, D_out, r]
    downs = jax.random.normal(k_dn, (num_loras, rank, d_in), dtype=jnp.float32) * 0.1
    ups = jax.random.normal(k_up, (num_loras, d_out, rank), dtype=jnp.float32) * 0.1
    # scale_i = multiplier_i * alpha_i / rank
    multipliers = jnp.array([0.75, 1.25], dtype=jnp.float32)
    alphas = jnp.array([4.0, 2.0], dtype=jnp.float32)
    scales = multipliers * alphas / rank

    out = lora_injector_forward(x, w, b, downs, ups, scales)
    out = jax.block_until_ready(out)

    ref = _reference(x, w, b, downs, ups, scales)
    assert out.shape == (batch, seq, d_out)
    # bf16 inputs + f32 accumulation vs a pure-f32 reference
    err = float(jnp.max(jnp.abs(out - ref)))
    assert jnp.allclose(out, ref, atol=3e-2, rtol=3e-2), f"max abs err {err}"

    print("KERNEL_OK")
</pallas_src>

<mosaic_0001>
module attributes {stable_mosaic.version = 11 : i64} {
  func.func @_lora_linear_kernel(%arg0: i32, %arg1: i32, %arg2: i32, %arg3: memref<128x128xbf16, #tpu.memory_space<vmem>>, %arg4: memref<128x128xbf16, #tpu.memory_space<vmem>>, %arg5: memref<1x128xf32, #tpu.memory_space<vmem>>, %arg6: memref<8x128xbf16, #tpu.memory_space<vmem>>, %arg7: memref<128x8xbf16, #tpu.memory_space<vmem>>, %arg8: memref<128x128xf32, #tpu.memory_space<vmem>>, %arg9: memref<128x128xf32, #tpu.memory_space<vmem>>, %arg10: memref<128x8xf32, #tpu.memory_space<vmem>>) attributes {dimension_semantics = [#tpu.dimension_semantics<parallel>, #tpu.dimension_semantics<parallel>, #tpu.dimension_semantics<arbitrary>], iteration_bounds = array<i64: 2, 2, 2>, scalar_prefetch = 0 : i64, scratch_operands = 2 : i64, tpu.core_type = #tpu.core_type<tc>, window_params = [{transform_indices = @transform_0, window_bounds = array<i64: 128, 128>}, {transform_indices = @transform_1, window_bounds = array<i64: 128, 128>}, {transform_indices = @transform_2, window_bounds = array<i64: 1, 128>}, {transform_indices = @transform_3, window_bounds = array<i64: 8, 128>}, {transform_indices = @transform_4, window_bounds = array<i64: 128, 8>}, {transform_indices = @transform_5, window_bounds = array<i64: 128, 128>}]} {
    %c0_i32 = arith.constant 0 : i32
    %0 = arith.cmpi eq, %arg2, %c0_i32 : i32
    %1 = arith.extui %0 : i1 to i32
    %c0_i32_0 = arith.constant 0 : i32
    %2 = arith.cmpi ne, %1, %c0_i32_0 : i32
    scf.if %2 {
      %cst_16 = arith.constant 0.000000e+00 : f32
      %17 = vector.broadcast %cst_16 : f32 to vector<128x128xf32>
      %c0_17 = arith.constant 0 : index
      %c0_18 = arith.constant 0 : index
      %18 = vector.load %arg9[%c0_17, %c0_18] : memref<128x128xf32, #tpu.memory_space<vmem>>, vector<128x128xf32>
      tpu.vector_store %arg9[%c0_17, %c0_18], %17 {strides = array<i32>} : memref<128x128xf32, #tpu.memory_space<vmem>>, vector<128x128xf32>,
      %cst_19 = arith.constant 0.000000e+00 : f32
      %19 = vector.broadcast %cst_19 : f32 to vector<128x8xf32>
      %c0_20 = arith.constant 0 : index
      %c0_21 = arith.constant 0 : index
      %20 = vector.load %arg10[%c0_20, %c0_21] : memref<128x8xf32, #tpu.memory_space<vmem>>, vector<128x8xf32>
      tpu.vector_store %arg10[%c0_20, %c0_21], %19 {strides = array<i32>} : memref<128x8xf32, #tpu.memory_space<vmem>>, vector<128x8xf32>,
    } else {
    }
    %c0 = arith.constant 0 : index
    %c0_1 = arith.constant 0 : index
    %3 = vector.load %arg3[%c0, %c0_1] : memref<128x128xbf16, #tpu.memory_space<vmem>>, vector<128x128xbf16>
    %c0_2 = arith.constant 0 : index
    %c0_3 = arith.constant 0 : index
    %4 = vector.load %arg9[%c0_2, %c0_3] : memref<128x128xf32, #tpu.memory_space<vmem>>, vector<128x128xf32>
    %c0_4 = arith.constant 0 : index
    %c0_5 = arith.constant 0 : index
    %5 = vector.load %arg4[%c0_4, %c0_5] : memref<128x128xbf16, #tpu.memory_space<vmem>>, vector<128x128xbf16>
    %cst = arith.constant dense<0.000000e+00> : vector<128x128xf32>
    %6 = tpu.matmul %3, %5, %cst {dimension_numbers = #tpu.dot_dimension_numbers<[1], [1], [0], [0], [0, 0, 1, 0], [], []>} : vector<128x128xbf16>, vector<128x128xbf16>, vector<128x128xf32> -> vector<128x128xf32>
    %7 = arith.addf %4, %6 : vector<128x128xf32>
    %c0_6 = arith.constant 0 : index
    %c0_7 = arith.constant 0 : index
    %8 = vector.load %arg9[%c0_6, %c0_7] : memref<128x128xf32, #tpu.memory_space<vmem>>, vector<128x128xf32>
    tpu.vector_store %arg9[%c0_6, %c0_7], %7 {strides = array<i32>} : memref<128x128xf32, #tpu.memory_space<vmem>>, vector<128x128xf32>,
    %c0_8 = arith.constant 0 : index
    %c0_9 = arith.constant 0 : index
    %9 = vector.load %arg10[%c0_8, %c0_9] : memref<128x8xf32, #tpu.memory_space<vmem>>, vector<128x8xf32>
    %c0_10 = arith.constant 0 : index
    %c0_11 = arith.constant 0 : index
    %10 = vector.load %arg6[%c0_10, %c0_11] : memref<8x128xbf16, #tpu.memory_space<vmem>>, vector<8x128xbf16>
    %cst_12 = arith.constant dense<0.000000e+00> : vector<128x8xf32>
    %11 = tpu.matmul %3, %10, %cst_12 {dimension_numbers = #tpu.dot_dimension_numbers<[1], [1], [0], [0], [0, 0, 1, 0], [], []>} : vector<128x128xbf16>, vector<8x128xbf16>, vector<128x8xf32> -> vector<128x8xf32>
    %12 = arith.addf %9, %11 : vector<128x8xf32>
    %c0_13 = arith.constant 0 : index
    %c0_14 = arith.constant 0 : index
    %13 = vector.load %arg10[%c0_13, %c0_14] : memref<128x8xf32, #tpu.memory_space<vmem>>, vector<128x8xf32>
    tpu.vector_store %arg10[%c0_13, %c0_14], %12 {strides = array<i32>} : memref<128x8xf32, #tpu.memory_space<vmem>>, vector<128x8xf32>,
    %c1_i32 = arith.constant 1 : i32
    %14 = arith.cmpi eq, %arg2, %c1_i32 : i32
    %15 = arith.extui %14 : i1 to i32
    %c0_i32_15 = arith.constant 0 : i32
    %16 = arith.cmpi ne, %15, %c0_i32_15 : i32
    scf.if %16 {
      %c0_16 = arith.constant 0 : index
      %c0_17 = arith.constant 0 : index
      %17 = vector.load %arg9[%c0_16, %c0_17] : memref<128x128xf32, #tpu.memory_space<vmem>>, vector<128x128xf32>
      %c0_18 = arith.constant 0 : index
      %c0_19 = arith.constant 0 : index
      %18 = vector.load %arg5[%c0_18, %c0_19] : memref<1x128xf32, #tpu.memory_space<vmem>>, vector<1x128xf32>
      %19 = vector.broadcast %18 : vector<1x128xf32> to vector<128x128xf32>
      %20 = arith.addf %17, %19 : vector<128x128xf32>
      %c0_20 = arith.constant 0 : index
      %c0_21 = arith.constant 0 : index
      %21 = vector.load %arg10[%c0_20, %c0_21] : memref<128x8xf32, #tpu.memory_space<vmem>>, vector<128x8xf32>
      %22 = arith.truncf %21 : vector<128x8xf32> to vector<128x8xbf16>
      %c0_22 = arith.constant 0 : index
      %c0_23 = arith.constant 0 : index
      %23 = vector.load %arg7[%c0_22, %c0_23] : memref<128x8xbf16, #tpu.memory_space<vmem>>, vector<128x8xbf16>
      %cst_24 = arith.constant dense<0.000000e+00> : vector<128x128xf32>
      %24 = tpu.matmul %22, %23, %cst_24 {dimension_numbers = #tpu.dot_dimension_numbers<[1], [1], [0], [0], [0, 0, 1, 0], [], []>} : vector<128x8xbf16>, vector<128x8xbf16>, vector<128x128xf32> -> vector<128x128xf32>
      %25 = arith.addf %20, %24 : vector<128x128xf32>
      %c0_25 = arith.constant 0 : index
      %c0_26 = arith.constant 0 : index
      %26 = vector.load %arg8[%c0_25, %c0_26] : memref<128x128xf32, #tpu.memory_space<vmem>>, vector<128x128xf32>
      tpu.vector_store %arg8[%c0_25, %c0_26], %25 {strides = array<i32>} : memref<128x128xf32, #tpu.memory_space<vmem>>, vector<128x128xf32>,
    } else {
    }
    return
  }
  func.func @transform_0(%arg0: i32, %arg1: i32, %arg2: i32) -> (i32, i32) {
    %c0_i32 = arith.constant 0 : i32
    return %arg0, %arg2 : i32, i32
  }
  func.func @transform_1(%arg0: i32, %arg1: i32, %arg2: i32) -> (i32, i32) {
    %c0_i32 = arith.constant 0 : i32
    return %arg1, %arg2 : i32, i32
  }
  func.func @transform_2(%arg0: i32, %arg1: i32, %arg2: i32) -> (i32, i32) {
    %c0_i32 = arith.constant 0 : i32
    %c0_i32_0 = arith.constant 0 : i32
    return %c0_i32, %arg1 : i32, i32
  }
  func.func @transform_3(%arg0: i32, %arg1: i32, %arg2: i32) -> (i32, i32) {
    %c0_i32 = arith.constant 0 : i32
    %c0_i32_0 = arith.constant 0 : i32
    return %c0_i32, %arg2 : i32, i32
  }
  func.func @transform_4(%arg0: i32, %arg1: i32, %arg2: i32) -> (i32, i32) {
    %c0_i32 = arith.constant 0 : i32
    %c0_i32_0 = arith.constant 0 : i32
    return %arg1, %c0_i32 : i32, i32
  }
  func.func @transform_5(%arg0: i32, %arg1: i32, %arg2: i32) -> (i32, i32) {
    %c0_i32 = arith.constant 0 : i32
    return %arg0, %arg1 : i32, i32
  }
}

</mosaic_0001>

<bundles_post_ra>
// kernel: tpu_custom_call.1
= control target key start
LH: loop header
LB: loop body
LE: loop exit
PB: predicated region body
PF: predicated region fallthrough
CT: control target
= control target key end

     0   :  { %s2216_s0 = inlined_call_operand.hbm [shape: bf16[256,256], index: 0, kind: input, shape index: {}]   ;;  %s2217_s1 = inlined_call_operand.hbm [shape: bf16[256,256], index: 1, kind: input, shape index: {}]   ;;  %s2218_s2 = inlined_call_operand.vmem [shape: f32[1,256], index: 2, kind: input, shape index: {}]   ;;  %s2219_s3 = inlined_call_operand.vmem [shape: bf16[8,256], index: 3, kind: input, shape index: {}]   ;;  %s2220_s4 = inlined_call_operand.vmem [shape: bf16[256,8], index: 4, kind: input, shape index: {}]   ;;  %s2221_s5 = inlined_call_operand.hbm [shape: f32[256,256], index: 5, kind: output, shape index: {}]  }
   0x1   :  { %2238 = sst [smem:[#allocation26_spill]] %s2216_s0 }
   0x2   :  { %2239 = sst [smem:[#allocation27_spill]] %s2217_s1 }
   0x3   :  { %2240 = sst [smem:[#allocation28_spill]] %s2218_s2 }
   0x4   :  { %2241 = sst [smem:[#allocation29_spill]] %s2219_s3 }
   0x5   :  { %2242 = sst [smem:[#allocation30_spill]] %s2220_s4 }
   0x6   :  { %2243 = sst [smem:[#allocation31_spill]] %s2221_s5 }
   0x7   :  { %10 = vsyncpa [#allocation5], 0 }
   0x8   :  { %12 = vsyncpa [#allocation5 + $0x1], 0 }
   0x9   :  { %13 = vsyncpa [#allocation8], 0 }
   0xa   :  { %15 = vsyncpa [#allocation8 + $0x1], 0 }
   0xb   :  { %16 = vsyncpa [#allocation6], 0 }
   0xc   :  { %18 = vsyncpa [#allocation6 + $0x1], 0  ;;  %s1772_s18 = smov 0   ;;  %s1774_s19 = smov 0  }
   0xd   :  { %s1776_s20 = smov 0   ;;  %s1778_s21 = smov 0  }
   0xe   :  { %s1780_s22 = smov 0   ;;  %s1782_s23 = smov 0  }
   0xf   :  { %s1784_s24 = smov 0   ;;  %s1786_s25 = smov 0  }
  0x10   :  { %s1788_s26 = smov 0   ;;  %s1790_s27 = smov 0  }
  0x11   :  { %s1792_s28 = smov 0   ;;  %s1794_s29 = smov 0  }
  0x12   :  { %s1796_s30 = smov 0   ;;  %s1798_s6 = smov 0  }
  0x13   :  { %s1800_s7 = smov 0   ;;  %s1802_s8 = smov 0  }
  0x14 LB: > { %2244 = sst [smem:[#allocation13_spill]] %s1705_s26  ;;  %s1153_s9 = sadd.s32 4294967295, %s1733_s8   ;;  %s1733_s8 = sphi %s1802_s8, %s24_s8   ;;  %s1729_s7 = sphi %s1800_s7, %s2295_s7   ;;  %s1725_s6 = sphi %s1798_s6, %s2294_s6   ;;  %s1721_s30 = sphi %s1796_s30, %s2293_s30   ;;  %s1717_s29 = sphi %s1794_s29, %s2292_s29   ;;  %s1713_s28 = sphi %s1792_s28, %s2306_s28   ;;  %s1709_s27 = sphi %s1790_s27, %s2305_s27   ;;  %s1705_s26 = sphi %s1788_s26, %s2289_s26   ;;  %s1701_s25 = sphi %s1786_s25, %s2304_s25   ;;  %s1697_s24 = sphi %s1784_s24, %s2303_s24   ;;  %s1693_s23 = sphi %s1782_s23, %s2302_s23   ;;  %s1689_s22 = sphi %s1780_s22, %s2301_s22   ;;  %s1685_s21 = sphi %s1778_s21, %s2300_s21   ;;  %s1681_s20 = sphi %s1776_s20, %s2299_s20   ;;  %s1677_s19 = sphi %s1774_s19, %s2298_s19   ;;  %s1673_s18 = sphi %s1772_s18, %s2296_s18  }
  0x15   : > { %2245 = sst [smem:[#allocation14_spill]] %s1709_s27  ;;  %s36_s10 = sadd.s32 1, %s1721_s30 }
  0x16   : > { %2246 = sst [smem:[#allocation15_spill]] %s1713_s28  ;;  %p1852_p0 = scmp.ge.s32.totalorder %s36_s10, 2 }
  0x17   : > { %2247 = sst [smem:[#allocation16_spill]] %s1717_s29  ;;  %p59_p1 = scmp.ne.s32.totalorder %s1705_s26, %s1701_s25 }
  0x18   : > { %2248 = sst [smem:[#allocation17_spill]] %s1721_s30  ;;  %s2308_s10 = smov (%p1852_p0, %s36_s10), 0 }
  0x19   : > { %2249 = sst [smem:[#allocation18_spill]] %s1725_s6  ;;  %p60_p2 = scmp.eq.s32.totalorder %s1733_s8, 0 }
  0x1a   : > { %2250 = sst [smem:[#allocation19_spill]] %s1729_s7  ;;  %p65_p3 = scmp.ne.s32.totalorder %s1701_s25, %s1697_s24 }
  0x1b   : > { %2252 = sst [smem:[#allocation20_spill]] %s2308_s10  ;;  %s1868_s14 = ssub.s32 %s1721_s30, %s2308_s10 }
  0x1c   : > { %p1870_p4 = scmp.eq.s32.totalorder %s1153_s9, 0  ;;  %p1876_p5 = por %p60_p2, %p59_p1 }
  0x1d   : > { %p1880_p6 = scmp.eq.s32.totalorder %s1153_s9, 7  ;;  %p1369_p8 = scmp.lt.s32.totalorder %s1733_s8, 8 }
  0x1e   : > { %p1886_p7 = por %p1870_p4, %p65_p3  ;;  %s223_s13 = sand.u32 1, %s1705_s26  }
  0x1f   : > { %s1157_s12 = sshll.u32 %s223_s13, 6  ;;  %s1284_s10 = sshll.u32 %s1729_s7, 5 }
  0x20   : > { %s232_s5 = sadd.s32 %s1721_s30, %s1284_s10  ;;  %s227_s29 = scalar_lea.vmem [#allocation4], %s1157_s12 }
  0x21   : > { %s237_s4 = sshll.u32 %s227_s29, 4  ;;  %s1160_s9 = sshll.u32 %s232_s5, 2  ;;  %s238_s4 = int_to_ptr.vmem [resolvable:$true] %s237_s4 }
  0x22   : > { %s2257_s0 = sld [smem:[#allocation26_spill]]  ;;  %p1359_p9 = pnand %p1369_p8, %p1876_p5 }
  0x23   : > { %s224_s29 = scalar_lea.sflag [#allocation5], %s223_s13  ;;  %s2226_s5 = smov 128  }
  0x24   : > { %s2227_s12 = smov 64   ;;  %s2228_s28 = smov 4  }
  0x25   : > { %p1165_p10 = scmp.ge.s32.totalorder %s1733_s8, 1  ;;  %p291_p11 = scmp.lt.s32.totalorder %s1733_s8, 9 }
  0x26   : > { %s1154_s3 = sadd.s32 4294967294, %s1733_s8   ;;  %s80_s13 = sadd.s32 1, %s1693_s23 }
  0x27   : > { %p1906_p12 = pnand %p1165_p10, %p291_p11  ;;  %p87_p13 = scmp.ne.s32.totalorder %s1693_s23, %s1689_s22 }
  0x28   : > { %s234_s27 = scalar_lea.hbm %s2257_s0, %s1160_s9  ;;  %p93_p1 = scmp.ne.s32.totalorder %s1689_s22, %s1685_s21 }
  0x29   : > { %s235_s10 = sshll.u32 %s234_s27, 4  ;;  %s39_s27 = sadd.s32 1, %s1725_s6  ;;  %s236_s10 = int_to_ptr.hbm [resolvable:$true] %s235_s10 }
  0x2a   : > { %1361 = dma.hbm_to_vmem [thread:$0]  (!%p1359_p9), %s236_s10, 1024, %s238_s4, %s224_s29, %s2226_s5, %s2227_s12, %s2228_s28  }
  0x2b   : > { %s2310_s27 = smov (!%p1852_p0, %s39_s27), %s1725_s6  ;;  %s186_s4 = sadd.s32 1, %s1681_s20 }
  0x2c   : > { %p41_p3 = scmp.ge.s32.totalorder %s2310_s27, 2  ;;  %p1923_p5 = por %p87_p13, %p60_p2 }
  0x2d   : > { %p1929_p9 = por %p93_p1, %p1870_p4  ;;  %s2262_s11 = sadd.s32 1, %s1729_s7 }
  0x2e   : > { %s2312_s27 = smov (%p41_p3, %s2310_s27), 0  ;;  %s2314_s11 = smov (!%p41_p3, %s2262_s11), %s1729_s7 }
  0x2f   : > { %2261 = sst [smem:[#allocation21_spill]] %s2312_s27  ;;  %s75_s21 = ssub.s32 %s1725_s6, %s2312_s27 }
  0x30   : > { %p196_p0 = scmp.ne.s32.totalorder %s1681_s20, %s1677_s19  ;;  %p45_p2 = scmp.ge.s32.totalorder %s2314_s11, 2 }
  0x31   : > { %s77_s10 = sor.u32 %s75_s21, %s1868_s14  ;;  %p202_p11 = scmp.ne.s32.totalorder %s1677_s19, %s1673_s18 }
  0x32   : > { %p78_p10 = scmp.eq.s32.totalorder %s77_s10, 0  ;;  %p1945_p4 = por %p1880_p6, %p196_p0 }
  0x33   : > { %s2316_s11 = smov (%p45_p2, %s2314_s11), 0  ;;  %p203_p3 = scmp.eq.s32.totalorder %s1154_s3, 7 }
  0x34   : > { %s2263_s15 = scalar_select %p1945_p4, 1, 0 }
  0x35   : > { %2265 = sst [smem:[#allocation23_spill]] %s2316_s11  ;;  %s47_s5 = ssub.s32 %s1729_s7, %s2316_s11 }
  0x36   : > { %2264 = sst [smem:[#allocation22_spill]] %s2263_s15  ;;  %s49_s12 = sor.u32 %s1868_s14, %s47_s5 }
  0x37   : > { %s1952_s29 = scalar_select %p78_p10, %s1693_s23, %s80_s13  }
  0x38   : > { %s183_s28 = sor.u32 %s75_s21, %s47_s5  ;;  %p50_p13 = scmp.eq.s32.totalorder %s49_s12, 0 }
  0x39   : > { %2266 = sst [smem:[#allocation24_spill]] %s1952_s29  ;;  %p184_p1 = scmp.eq.s32.totalorder %s183_s28, 0 }
  0x3a   : > { %s247_s17 = sand.u32 1, %s1693_s23   ;;  %s2267_s10 = sadd.s32 1, %s1705_s26 }
  0x3b   : > { %s1963_s0 = scalar_select %p50_p13, %s1705_s26, %s2267_s10  }
  0x3c   : > { %s1966_s27 = scalar_select %p184_p1, %s1681_s20, %s186_s4  }
  0x3d   : > { %2268 = sst [smem:[#allocation25_spill]] %s1963_s0  ;;  %p1968_p6 = por %p203_p3, %p202_p11 }
  0x3e   : > { %s1161_s13 = sshll.u32 %s247_s17, 6  ;;  %s1285_s11 = sshll.u32 %s1725_s6, 5 }
  0x3f   : > { %s256_s7 = sadd.s32 %s1721_s30, %s1285_s11  ;;  %s251_s5 = scalar_lea.vmem [#allocation7], %s1161_s13 }
  0x40   : > { %s1164_s14 = sshll.u32 %s256_s7, 2  ;;  %s261_s12 = sshll.u32 %s251_s5, 4  ;;  %s262_s12 = int_to_ptr.vmem [resolvable:$true] %s261_s12 }
  0x41   : > { %s2270_s1 = sld [smem:[#allocation27_spill]]  ;;  %p1362_p0 = pnand %p1369_p8, %p1923_p5 }
  0x42   : > { %s248_s4 = scalar_lea.sflag [#allocation8], %s247_s17  ;;  %s2271_s10 = smov 4  }
  0x43   : > { %s2272_s0 = smov 64   ;;  %s2273_s26 = smov 128  }
  0x44   : > { %s297_s7 = sand.u32 (!%p1906_p12), 1, %s1701_s25  }
  0x45   : > { %295 = sbr.rel (%p1906_p12) target bundleno = 636 (0x27c), region = 40  ;;  %s1166_s11 = sshll.u32 (!%p1906_p12), %s297_s7, 6 }
  0x46   : > { %s298_s29 = scalar_lea.sflag (!%p1906_p12), [#allocation5], %s297_s7  ;;  %s1987_s13 = scalar_lea.vmem (!%p1906_p12), [#allocation4], %s1166_s11 }
  0x47   : > { %s258_s28 = scalar_lea.hbm %s2270_s1, %s1164_s14 }
  0x48   : > { %s259_s3 = sshll.u32 %s258_s28, 4  ;;  %s260_s3 = int_to_ptr.hbm [resolvable:$true] %s259_s3 }
  0x49   : > { %1364 = dma.hbm_to_vmem [thread:$0]  (!%p1362_p0), %s260_s3, 1024, %s262_s12, %s248_s4, %s2273_s26, %s2272_s0, %s2271_s10  }
  0x4a   : > { %1660 = dma.done.wait (%p1886_p7), %s298_s29, 1024  }
  0x4b   : > { %1662 = vsyncadd (%p1886_p7), %s298_s29, 4294966272  ;;  %s307_s16 = sand.u32 1, %s1689_s22  }
  0x4c   : > { %s1167_s17 = sshll.u32 %s307_s16, 6  ;;  %s308_s0 = scalar_lea.sflag [#allocation8], %s307_s16 }
  0x4d   : > { %s1994_s26 = scalar_lea.vmem [#allocation7], %s1167_s17 }
  0x4e   : > { %1664 = dma.done.wait (%p1929_p9), %s308_s0, 1024  }
  0x4f   : > { %1666 = vsyncadd (%p1929_p9), %s308_s0, 4294966272  ;;  %s2274_s2 = sld [smem:[#allocation15_spill]]  ;;  %s2235_s24 = sand.u32 1, %s1677_s19  }
  0x50   : > { %s2275_s14 = sld [smem:[#allocation14_spill]]  ;;  %s1168_s5 = sshll.u32 %s2235_s24, 7 }
  0x51   : > { %s2276_s3 = sld [smem:[#allocation28_spill]]  ;;  %s2024_s30 = scalar_lea.vmem [#allocation9], %s1168_s5 }
  0x52   : > { %s2277_s29 = sld [smem:[#allocation29_spill]] }
  0x53   : > { %s2278_s1 = sld [smem:[#allocation30_spill]] }
  0x55   : > { %p358_p7 = scmp.lt.s32.totalorder %s2274_s2, 1  ;;  %s1170_s12 = sshll.u32 %s2274_s2, 4 }
  0x56   : > { %p361_p8 = scmp.lt.s32.totalorder %s2275_s14, 1  ;;  %p366_p12 = scmp.lt.s32.totalorder %s1170_s12, 31 }
  0x57   : > { %s2318_s2 = smov (!%p358_p7, %s2274_s2), 1  ;;  %p1172_p5 = scmp.ne.s32.totalorder %s2275_s14, 0 }
  0x58   : > { %s362_s21 = scalar_select %p361_p8, %s2275_s14, 1 }
  0x59   : > { %s360_s4 = scalar_lea.vmem %s2276_s3, %s2318_s2  ;;  %s2320_s12 = smov (!%p366_p12, %s1170_s12), 31 }
  0x5a   : > { %s1169_s10 = sshll.u32 %s362_s21, 2  ;;  %s1171_s17 = sshll.u32 %s2320_s12, 2 }
  0x5b   : > { %s2017_s16 = scalar_lea.vmem %s2277_s29, %s1169_s10  ;;  %s2022_s6 = scalar_lea.vmem %s2278_s1, %s1171_s17 }
  0x5c   : > { %376 = sbr.rel (%p1172_p5) target bundleno = 130 (0x82), region = 52 }
  0x61   : > { %v1738_v0 = vmov 0.0   ;;  %vm393_vm0 = vcmask 64512  }
  0x62   : > { %377 = vst [vmem:[#allocation2 + $0x30] sm:$0xff] %v1738_v0 }
  0x63   : > { %378 = vst [vmem:[#allocation2] sm:$0xff] %v1738_v0 }
  0x64   : > { %379 = vst [vmem:[#allocation2 + $0x58] sm:$0xff] %v1738_v0 }
  0x65   : > { %380 = vst [vmem:[#allocation2 + $0x18] sm:$0xff] %v1738_v0 }
  0x66   : > { %381 = vst [vmem:[#allocation2 + $0x50] sm:$0xff] %v1738_v0 }
  0x67   : > { %382 = vst [vmem:[#allocation2 + $0x68] sm:$0xff] %v1738_v0 }
  0x68   : > { %383 = vst [vmem:[#allocation2 + $0x8] sm:$0xff] %v1738_v0 }
  0x69   : > { %384 = vst [vmem:[#allocation2 + $0x48] sm:$0xff] %v1738_v0 }
  0x6a   : > { %385 = vst [vmem:[#allocation2 + $0x40] sm:$0xff] %v1738_v0 }
  0x6b   : > { %386 = vst [vmem:[#allocation2 + $0x20] sm:$0xff] %v1738_v0 }
  0x6c   : > { %387 = vst [vmem:[#allocation2 + $0x10] sm:$0xff] %v1738_v0 }
  0x6d   : > { %388 = vst [vmem:[#allocation2 + $0x38] sm:$0xff] %v1738_v0 }
  0x6e   : > { %389 = vst [vmem:[#allocation2 + $0x60] sm:$0xff] %v1738_v0 }
  0x6f   : > { %390 = vst [vmem:[#allocation2 + $0x70] sm:$0xff] %v1738_v0 }
  0x70   : > { %391 = vst [vmem:[#allocation2 + $0x78] sm:$0xff] %v1738_v0 }
  0x71   : > { %392 = vst [vmem:[#allocation2 + $0x28] sm:$0xff] %v1738_v0 }
  0x72   : > { %394 = vst.msk [vmem:[#allocation3] sm:$0xff] %vm393_vm0, %v1738_v0 }
  0x73   : > { %395 = vst.msk [vmem:[#allocation3 + $0x8] sm:$0xff] %vm393_vm0, %v1738_v0 }
  0x74   : > { %396 = vst.msk [vmem:[#allocation3 + $0x10] sm:$0xff] %vm393_vm0, %v1738_v0 }
  0x75   : > { %397 = vst.msk [vmem:[#allocation3 + $0x18] sm:$0xff] %vm393_vm0, %v1738_v0 }
  0x76   : > { %398 = vst.msk [vmem:[#allocation3 + $0x20] sm:$0xff] %vm393_vm0, %v1738_v0 }
  0x77   : > { %399 = vst.msk [vmem:[#allocation3 + $0x28] sm:$0xff] %vm393_vm0, %v1738_v0 }
  0x78   : > { %400 = vst.msk [vmem:[#allocation3 + $0x30] sm:$0xff] %vm393_vm0, %v1738_v0 }
  0x79   : > { %401 = vst.msk [vmem:[#allocation3 + $0x38] sm:$0xff] %vm393_vm0, %v1738_v0 }
  0x7a   : > { %402 = vst.msk [vmem:[#allocation3 + $0x40] sm:$0xff] %vm393_vm0, %v1738_v0 }
  0x7b   : > { %403 = vst.msk [vmem:[#allocation3 + $0x48] sm:$0xff] %vm393_vm0, %v1738_v0 }
  0x7c   : > { %404 = vst.msk [vmem:[#allocation3 + $0x50] sm:$0xff] %vm393_vm0, %v1738_v0 }
  0x7d   : > { %405 = vst.msk [vmem:[#allocation3 + $0x58] sm:$0xff] %vm393_vm0, %v1738_v0 }
  0x7e   : > { %406 = vst.msk [vmem:[#allocation3 + $0x60] sm:$0xff] %vm393_vm0, %v1738_v0 }
  0x7f   : > { %407 = vst.msk [vmem:[#allocation3 + $0x68] sm:$0xff] %vm393_vm0, %v1738_v0 }
  0x80   : > { %408 = vst.msk [vmem:[#allocation3 + $0x70] sm:$0xff] %vm393_vm0, %v1738_v0 }
  0x81   : > { %409 = vst.msk [vmem:[#allocation3 + $0x78] sm:$0xff] %vm393_vm0, %v1738_v0 }
  0x82 PF: > { %v1301_v1 = vld [vmem:[%s1994_s26 + $0x38] sm:$0xff]  ;;  %v651_v2 = vld [vmem:[%s2017_s16] sm:$0xf]  ;;  %v1300_v4 = vld [vmem:[%s1994_s26 + $0x30] sm:$0xff]  ;;  %vm717_vm1 = vcmask 64512   ;;  %s2279_s1 = sld [smem:[#allocation14_spill]] }
  0x83   : > { %659 = vmatpush.bf16.xpose.msra.mxu1 %v651_v2  ;;  %1312 = vmatpush.bf16.xpose.msra.mxu3 %v1301_v1  ;;  %v1286_v3 = vld [vmem:[%s1987_s13] sm:$0xff]  ;;  %v1299_v5 = vld [vmem:[%s1994_s26 + $0x28] sm:$0xff]  ;;  %v1297_v8 = vld [vmem:[%s1994_s26 + $0x18] sm:$0xff] }
  0x84   : > { %554 = vmatpush.bf16.xpose.msra.mxu0 %v1301_v1  ;;  %1311 = vmatpush.bf16.xpose.msra.mxu2 %v1301_v1  ;;  %v1287_v6 = vld [vmem:[%s1987_s13 + $0x8] sm:$0xff]  ;;  %v1298_v7 = vld [vmem:[%s1994_s26 + $0x20] sm:$0xff]  ;;  %v1288_v9 = vld [vmem:[%s1987_s13 + $0x10] sm:$0xff] }
  0x85   : > { %v1296_v10 = vld [vmem:[%s1994_s26 + $0x10] sm:$0xff]  ;;  %v1295_v11 = vld [vmem:[%s1994_s26 + $0x8] sm:$0xff]  ;;  %v1289_v12 = vld [vmem:[%s1987_s13 + $0x18] sm:$0xff] }
  0x86   : > { %v1294_v13 = vld [vmem:[%s1994_s26] sm:$0xff]  ;;  %v1291_v15 = vld [vmem:[%s1987_s13 + $0x28] sm:$0xff]  ;;  %v1293_v16 = vld [vmem:[%s1987_s13 + $0x38] sm:$0xff] }
  0x87   : > { %v1290_v14 = vld [vmem:[%s1987_s13 + $0x20] sm:$0xff]  ;;  %v1292_v17 = vld [vmem:[%s1987_s13 + $0x30] sm:$0xff]  ;;  %v636_v21 = vld [vmem:[#allocation3 + $0x8] sm:$0xff] }
  0x88   : > { %v635_v18 = vld [vmem:[#allocation3] sm:$0xff]  ;;  %v637_v24 = vld [vmem:[#allocation3 + $0x10] sm:$0xff]  ;;  %v638_v27 = vld [vmem:[#allocation3 + $0x18] sm:$0xff]  ;;  %p1237_p9 = scmp.ne.s32.totalorder %s2279_s1, 1 }
  0x89   : > { %v639_v30 = vld [vmem:[#allocation3 + $0x20] sm:$0xff]  ;;  %v640_v33 = vld [vmem:[#allocation3 + $0x28] sm:$0xff]  ;;  %v641_v36 = vld [vmem:[#allocation3 + $0x30] sm:$0xff] }
  0x8a   : > { %660 = vmatmul.bf16.vlgmr.msra.gmra.mxu1 %v1286_v3  ;;  %v642_v39 = vld [vmem:[#allocation3 + $0x38] sm:$0xff]  ;;  %v426_v40 = vld [vmem:[#allocation2 + $0x30] sm:$0xff]  ;;  %v434_v45 = vld [vmem:[#allocation2 + $0x40] sm:$0xff] }
  0x8b   : > { %1314 = vmatpush.bf16.xpose.msra.mxu3 %v1300_v4  ;;  %v643_v46 = vld [vmem:[#allocation3 + $0x40] sm:$0xff]  ;;  %v432_v47 = vld [vmem:[#allocation2 + $0x8] sm:$0xff]  ;;  %v428_v61 = vld [vmem:[#allocation2 + $0x58] sm:$0xff] }
  0x8c   : > { %555 = vmatpush.bf16.xpose.msra.mxu0 %v1300_v4  ;;  %1313 = vmatpush.bf16.xpose.msra.mxu2 %v1300_v4  ;;  %v427_v49 = vld [vmem:[#allocation2] sm:$0xff]  ;;  %v644_v58 = vld [vmem:[#allocation3 + $0x48] sm:$0xff] }
  0x8d   : > { %v435_v57 = vld [vmem:[#allocation2 + $0x20] sm:$0xff]  ;;  %v433_v59 = vld [vmem:[#allocation2 + $0x48] sm:$0xff] }
  0x93   : > { %1316 = vmatpush.bf16.xpose.msra.mxu3 %v1299_v5 }
  0x94   : > { %556 = vmatpush.bf16.xpose.msra.mxu0 %v1299_v5  ;;  %1315 = vmatpush.bf16.xpose.msra.mxu2 %v1299_v5  ;;  %v436_v5 = vld [vmem:[#allocation2 + $0x10] sm:$0xff] }
  0x9a   : > { %665 = vmatmul.bf16.gmra.mxu1 %v1287_v6 }
  0x9b   : > { %1318 = vmatpush.bf16.xpose.msra.mxu3 %v1298_v7 }
  0x9c   : > { %557 = vmatpush.bf16.xpose.msra.mxu0 %v1298_v7  ;;  %1317 = vmatpush.bf16.xpose.msra.mxu2 %v1298_v7  ;;  %v649_v7 = vld [vmem:[#allocation3 + $0x70] sm:$0xff] }
  0xa3   : > { %1320 = vmatpush.bf16.xpose.msra.mxu3 %v1297_v8 }
  0xa4   : > { %558 = vmatpush.bf16.xpose.msra.mxu0 %v1297_v8  ;;  %1319 = vmatpush.bf16.xpose.msra.mxu2 %v1297_v8 }
  0xaa   : > { %670 = vmatmul.bf16.gmra.mxu1 %v1288_v9 }
  0xab   : > { %1322 = vmatpush.bf16.xpose.msra.mxu3 %v1296_v10 }
  0xac   : > { %559 = vmatpush.bf16.xpose.msra.mxu0 %v1296_v10  ;;  %1321 = vmatpush.bf16.xpose.msra.mxu2 %v1296_v10 }
  0xb3   : > { %1324 = vmatpush.bf16.xpose.msra.mxu3 %v1295_v11 }
  0xb4   : > { %560 = vmatpush.bf16.xpose.msra.mxu0 %v1295_v11  ;;  %1323 = vmatpush.bf16.xpose.msra.mxu2 %v1295_v11 }
  0xba   : > { %675 = vmatmul.bf16.gmra.mxu1 %v1289_v12 }
  0xbb   : > { %1326 = vmatpush.bf16.xpose.msra.mxu3 %v1294_v13 }
  0xbc   : > { %561 = vmatpush.bf16.xpose.msra.mxu0 %v1294_v13  ;;  %1325 = vmatpush.bf16.xpose.msra.mxu2 %v1294_v13 }
  0xc2   : > { %582 = vmatmul.bf16.vlgmr.msra.gmra.mxu3 %v1290_v14 }
  0xc3   : > { %562 = vmatmul.bf16.vlgmr.msra.gmra.mxu0 %v1286_v3  ;;  %577 = vmatmul.bf16.vlgmr.msra.gmra.mxu2 %v1289_v12 }
  0xc4   : > { %1327 = vmatpush.bf16.xpose.msrb.mxu2 %v651_v2 }
  0xca   : > { %680 = vmatmul.bf16.gmra.mxu1 %v1290_v14 }
  0xd2   : > { %587 = vmatmul.bf16.gmra.mxu3 %v1291_v15 }
  0xd3   : > { %567 = vmatmul.bf16.gmra.mxu0 %v1287_v6  ;;  %695 = vmatmul.bf16.vlgmr.msrb.gmra.mxu2 %v1293_v16  ;;  %v645_v6 = vld [vmem:[#allocation3 + $0x50] sm:$0xff] }
  0xda   : > { %685 = vmatmul.bf16.gmra.mxu1 %v1291_v15 }
  0xe2   : > { %592 = vmatmul.bf16.gmra.mxu3 %v1292_v17 }
  0xe3   : > { %572 = vmatmul.bf16.gmra.mxu0 %v1288_v9  ;;  %v429_v9 = vld [vmem:[#allocation2 + $0x18] sm:$0xff] }
  0xea   : > { %690 = vmatmul.bf16.gmra.mxu1 %v1292_v17  ;;  %v437_v17 = vld [vmem:[#allocation2 + $0x38] sm:$0xff] }
  0xf2   : > { %597 = vmatmul.bf16.gmra.mxu3 %v1293_v16 }
 0x107   : > { %v661_v19 = vpop.f32.mrf.mxu1 }
 0x108   : > { %v701_v20 = vadd.f32 %v661_v19, %v635_v18  ;;  %v646_v18 = vld [vmem:[#allocation3 + $0x58] sm:$0xff] }
 0x109   : > { %v650_v19 = vld [vmem:[#allocation3 + $0x78] sm:$0xff] }
 0x10a   : > { %718 = vst.msk [vmem:[#allocation3] sm:$0xff] %vm717_vm1, %v701_v20 }
 0x10f   : > { %v663_v22 = vpop.f32.mrf.mxu1 }
 0x110   : > { %v702_v23 = vadd.f32 %v663_v22, %v636_v21  ;;  %v430_v21 = vld [vmem:[#allocation2 + $0x50] sm:$0xff] }
 0x112   : > { %719 = vst.msk [vmem:[#allocation3 + $0x8] sm:$0xff] %vm717_vm1, %v702_v23 }
 0x117   : > { %v666_v25 = vpop.f32.mrf.mxu1 }
 0x118   : > { %v703_v26 = vadd.f32 %v666_v25, %v637_v24 }
 0x11a   : > { %720 = vst.msk [vmem:[#allocation3 + $0x10] sm:$0xff] %vm717_vm1, %v703_v26 }
 0x11f   : > { %v668_v28 = vpop.f32.mrf.mxu1 }
 0x120   : > { %v704_v29 = vadd.f32 %v668_v28, %v638_v27 }
 0x122   : > { %721 = vst.msk [vmem:[#allocation3 + $0x18] sm:$0xff] %vm717_vm1, %v704_v29  ;;  %v438_v29 = vld [vmem:[#allocation2 + $0x60] sm:$0xff] }
 0x127   : > { %v671_v31 = vpop.f32.mrf.mxu1 }
 0x128   : > { %v705_v32 = vadd.f32 %v671_v31, %v639_v30  ;;  %v647_v30 = vld [vmem:[#allocation3 + $0x60] sm:$0xff] }
 0x12a   : > { %722 = vst.msk [vmem:[#allocation3 + $0x20] sm:$0xff] %vm717_vm1, %v705_v32  ;;  %v431_v32 = vld [vmem:[#allocation2 + $0x68] sm:$0xff] }
 0x12f   : > { %v673_v34 = vpop.f32.mrf.mxu1 }
 0x130   : > { %v706_v35 = vadd.f32 %v673_v34, %v640_v33 }
 0x132   : > { %723 = vst.msk [vmem:[#allocation3 + $0x28] sm:$0xff] %vm717_vm1, %v706_v35 }
 0x137   : > { %v676_v37 = vpop.f32.mrf.mxu1 }
 0x138   : > { %v707_v38 = vadd.f32 %v676_v37, %v641_v36 }
 0x13a   : > { %724 = vst.msk [vmem:[#allocation3 + $0x30] sm:$0xff] %vm717_vm1, %v707_v38  ;;  %v439_v38 = vld [vmem:[#allocation2 + $0x70] sm:$0xff] }
 0x13f   : > { %v678_v41 = vpop.f32.mrf.mxu1 }
 0x140   : > { %v708_v42 = vadd.f32 %v678_v41, %v642_v39  ;;  %v563_v43 = vpop.f32.mrf.mxu0  ;;  %v648_v39 = vld [vmem:[#allocation3 + $0x68] sm:$0xff] }
 0x141   : > { %v603_v44 = vadd.f32 %v563_v43, %v426_v40 }
 0x142   : > { %725 = vst.msk [vmem:[#allocation3 + $0x38] sm:$0xff] %vm717_vm1, %v708_v42 }
 0x143   : > { %619 = vst [vmem:[#allocation2 + $0x30] sm:$0xff] %v603_v44  ;;  %v440_v44 = vld [vmem:[#allocation2 + $0x78] sm:$0xff] }
 0x145   : > { %v583_v48 = vpop.f32.mrf.mxu3 }
 0x146   : > { %v611_v50 = vadd.f32 %v583_v48, %v434_v45  ;;  %v578_v52 = vpop.f32.mrf.mxu2 }
 0x147   : > { %v681_v51 = vpop.f32.mrf.mxu1  ;;  %v609_v55 = vadd.f32 %v578_v52, %v432_v47  ;;  %v441_v47 = vld [vmem:[#allocation2 + $0x28] sm:$0xff] }
 0x148   : > { %v709_v53 = vadd.f32 %v681_v51, %v643_v46  ;;  %v565_v54 = vpop.f32.mrf.mxu0  ;;  %627 = vst [vmem:[#allocation2 + $0x40] sm:$0xff] %v611_v50 }
 0x149   : > { %v604_v56 = vadd.f32 %v565_v54, %v427_v49  ;;  %625 = vst [vmem:[#allocation2 + $0x8] sm:$0xff] %v609_v55 }
 0x14a   : > { %726 = vst.msk [vmem:[#allocation3 + $0x40] sm:$0xff] %vm717_vm1, %v709_v53 }
 0x14b   : > { %620 = vst [vmem:[#allocation2] sm:$0xff] %v604_v56 }
 0x14d   : > { %v585_v60 = vpop.f32.mrf.mxu3 }
 0x14e   : > { %v612_v62 = vadd.f32 %v585_v60, %v435_v57  ;;  %v580_v0 = vpop.f32.mrf.mxu2 }
 0x14f   : > { %v683_v63 = vpop.f32.mrf.mxu1  ;;  %v610_v3 = vadd.f32 %v580_v0, %v433_v59 }
 0x150   : > { %v710_v1 = vadd.f32 %v683_v63, %v644_v58  ;;  %v568_v2 = vpop.f32.mrf.mxu0  ;;  %628 = vst [vmem:[#allocation2 + $0x20] sm:$0xff] %v612_v62 }
 0x151   : > { %v605_v4 = vadd.f32 %v568_v2, %v428_v61  ;;  %626 = vst [vmem:[#allocation2 + $0x48] sm:$0xff] %v610_v3 }
 0x152   : > { %727 = vst.msk [vmem:[#allocation3 + $0x48] sm:$0xff] %vm717_vm1, %v710_v1 }
 0x153   : > { %621 = vst [vmem:[#allocation2 + $0x58] sm:$0xff] %v605_v4 }
 0x155   : > { %v588_v8 = vpop.f32.mrf.mxu3 }
 0x156   : > { %v613_v10 = vadd.f32 %v588_v8, %v436_v5  ;;  %v696_v12 = vpop.f32.mrf.mxu2 }
 0x157   : > { %v686_v11 = vpop.f32.mrf.mxu1  ;;  %v715_v15 = vadd.f32 %v696_v12, %v649_v7 }
 0x158   : > { %v711_v13 = vadd.f32 %v686_v11, %v645_v6  ;;  %v570_v14 = vpop.f32.mrf.mxu0  ;;  %629 = vst [vmem:[#allocation2 + $0x10] sm:$0xff] %v613_v10 }
 0x159   : > { %v606_v16 = vadd.f32 %v570_v14, %v429_v9  ;;  %732 = vst.msk [vmem:[#allocation3 + $0x70] sm:$0xff] %vm717_vm1, %v715_v15 }
 0x15a   : > { %728 = vst.msk [vmem:[#allocation3 + $0x50] sm:$0xff] %vm717_vm1, %v711_v13 }
 0x15b   : > { %622 = vst [vmem:[#allocation2 + $0x18] sm:$0xff] %v606_v16 }
 0x15d   : > { %v590_v20 = vpop.f32.mrf.mxu3 }
 0x15e   : > { %v614_v22 = vadd.f32 %v590_v20, %v437_v17  ;;  %v698_v24 = vpop.f32.mrf.mxu2 }
 0x15f   : > { %v688_v23 = vpop.f32.mrf.mxu1  ;;  %v716_v27 = vadd.f32 %v698_v24, %v650_v19 }
 0x160   : > { %v712_v25 = vadd.f32 %v688_v23, %v646_v18  ;;  %v573_v26 = vpop.f32.mrf.mxu0  ;;  %630 = vst [vmem:[#allocation2 + $0x38] sm:$0xff] %v614_v22 }
 0x161   : > { %v607_v28 = vadd.f32 %v573_v26, %v430_v21  ;;  %733 = vst.msk [vmem:[#allocation3 + $0x78] sm:$0xff] %vm717_vm1, %v716_v27 }
 0x162   : > { %729 = vst.msk [vmem:[#allocation3 + $0x58] sm:$0xff] %vm717_vm1, %v712_v25 }
 0x163   : > { %623 = vst [vmem:[#allocation2 + $0x50] sm:$0xff] %v607_v28 }
 0x165   : > { %v593_v31 = vpop.f32.mrf.mxu3 }
 0x166   : > { %v615_v33 = vadd.f32 %v593_v31, %v438_v29 }
 0x167   : > { %v691_v34 = vpop.f32.mrf.mxu1 }
 0x168   : > { %v713_v35 = vadd.f32 %v691_v34, %v647_v30  ;;  %v575_v36 = vpop.f32.mrf.mxu0  ;;  %631 = vst [vmem:[#allocation2 + $0x60] sm:$0xff] %v615_v33 }
 0x169   : > { %v608_v37 = vadd.f32 %v575_v36, %v431_v32 }
 0x16a   : > { %730 = vst.msk [vmem:[#allocation3 + $0x60] sm:$0xff] %vm717_vm1, %v713_v35 }
 0x16b   : > { %624 = vst [vmem:[#allocation2 + $0x68] sm:$0xff] %v608_v37 }
 0x16d   : > { %v595_v40 = vpop.f32.mrf.mxu3 }
 0x16e   : > { %v616_v41 = vadd.f32 %v595_v40, %v439_v38 }
 0x16f   : > { %v693_v42 = vpop.f32.mrf.mxu1 }
 0x170   : > { %v714_v43 = vadd.f32 %v693_v42, %v648_v39  ;;  %632 = vst [vmem:[#allocation2 + $0x70] sm:$0xff] %v616_v41 }
 0x172   : > { %731 = vst.msk [vmem:[#allocation3 + $0x68] sm:$0xff] %vm717_vm1, %v714_v43 }
 0x175   : > { %v598_v45 = vpop.f32.mrf.mxu3 }
 0x176   : > { %v617_v46 = vadd.f32 %v598_v45, %v440_v44 }
 0x178   : > { %633 = vst [vmem:[#allocation2 + $0x78] sm:$0xff] %v617_v46 }
 0x17c   : > { %737 = sbr.rel (%p1237_p9) target bundleno = 611 (0x263), region = 56 }
 0x17d   : > { %v600_v48 = vpop.f32.mrf.mxu3 }
 0x17e   : > { %v618_v49 = vadd.f32 %v600_v48, %v441_v47 }
 0x180   : > { %634 = vst [vmem:[#allocation2 + $0x28] sm:$0xff] %v618_v49 }
 0x181   : > { %v1309_v50 = vld [vmem:[%s2022_s6 + $0x38] sm:$0xff]  ;;  %v1308_v52 = vld [vmem:[%s2022_s6 + $0x30] sm:$0xff]  ;;  %v1307_v54 = vld [vmem:[%s2022_s6 + $0x28] sm:$0xff] }
 0x182   : > { %v900_v51 = vsel %vm717_vm1, %v1309_v50, 0  ;;  %v897_v53 = vsel %vm717_vm1, %v1308_v52, 0  ;;  %v894_v55 = vsel %vm717_vm1, %v1307_v54, 0  ;;  %v1306_v56 = vld [vmem:[%s2022_s6 + $0x20] sm:$0xff]  ;;  %v1305_v58 = vld [vmem:[%s2022_s6 + $0x18] sm:$0xff]  ;;  %v1304_v60 = vld [vmem:[%s2022_s6 + $0x10] sm:$0xff] }
 0x183   : > { %902 = vmatpush.bf16.xpose.msra.mxu0 %v900_v51  ;;  %1328 = vmatpush.bf16.xpose.msra.mxu1 %v900_v51  ;;  %v891_v57 = vsel %vm717_vm1, %v1306_v56, 0  ;;  %v888_v59 = vsel %vm717_vm1, %v1305_v58, 0  ;;  %v885_v61 = vsel %vm717_vm1, %v1304_v60, 0  ;;  %v1303_v62 = vld [vmem:[%s2022_s6 + $0x8] sm:$0xff]  ;;  %v1302_v0 = vld [vmem:[%s2022_s6] sm:$0xff]  ;;  %v776_v14 = vld [vmem:[#allocation3 + $0x10] sm:$0xff] }
 0x184   : > { %1329 = vmatpush.bf16.xpose.msra.mxu2 %v900_v51  ;;  %1330 = vmatpush.bf16.xpose.msra.mxu3 %v900_v51  ;;  %v882_v63 = vsel %vm717_vm1, %v1303_v62, 0  ;;  %v879_v1 = vsel %vm717_vm1, %v1302_v0, 0  ;;  %v774_v2 = vld [vmem:[#allocation3] sm:$0xff]  ;;  %v775_v3 = vld [vmem:[#allocation3 + $0x8] sm:$0xff]  ;;  %v777_v15 = vld [vmem:[#allocation3 + $0x18] sm:$0xff] }
 0x185   : > { %v778_v4 = vld [vmem:[#allocation3 + $0x20] sm:$0xff]  ;;  %v779_v5 = vld [vmem:[#allocation3 + $0x28] sm:$0xff]  ;;  %v790_v10 = vpack.c.bf16 %v775_v3, %v774_v2  ;;  %v780_v16 = vld [vmem:[#allocation3 + $0x30] sm:$0xff]  ;;  %v791_v22 = vpack.c.bf16 %v777_v15, %v776_v14 }
 0x186   : > { %v782_v6 = vld [vmem:[#allocation3 + $0x40] sm:$0xff]  ;;  %v783_v7 = vld [vmem:[#allocation3 + $0x48] sm:$0xff]  ;;  %v792_v11 = vpack.c.bf16 %v779_v5, %v778_v4  ;;  %v781_v17 = vld [vmem:[#allocation3 + $0x38] sm:$0xff] }
 0x187   : > { %v786_v8 = vld [vmem:[#allocation3 + $0x60] sm:$0xff]  ;;  %v787_v9 = vld [vmem:[#allocation3 + $0x68] sm:$0xff]  ;;  %v794_v12 = vpack.c.bf16 %v783_v7, %v782_v6  ;;  %v784_v18 = vld [vmem:[#allocation3 + $0x50] sm:$0xff]  ;;  %v793_v23 = vpack.c.bf16 %v781_v17, %v780_v16 }
 0x188   : > { %v796_v13 = vpack.c.bf16 %v787_v9, %v786_v8  ;;  %v785_v19 = vld [vmem:[#allocation3 + $0x58] sm:$0xff]  ;;  %v788_v20 = vld [vmem:[#allocation3 + $0x70] sm:$0xff]  ;;  %v2106_v26 = vld [vmem:[%s360_s4] ss:$0 sm:$0xff] }
 0x189   : > { %v789_v21 = vld [vmem:[#allocation3 + $0x78] sm:$0xff]  ;;  %v795_v24 = vpack.c.bf16 %v785_v19, %v784_v18  ;;  %v738_v27 = vld [vmem:[#allocation2 + $0x30] sm:$0xff]  ;;  %v746_v35 = vld [vmem:[#allocation2 + $0x40] sm:$0xff] }
 0x18a   : > { %v797_v25 = vpack.c.bf16 %v789_v21, %v788_v20  ;;  %v742_v28 = vld [vmem:[#allocation2 + $0x50] sm:$0xff]  ;;  %v758_v29 = vadd.f32 %v2106_v26, %v738_v27  ;;  %v750_v36 = vld [vmem:[#allocation2 + $0x60] sm:$0xff]  ;;  %v743_v38 = vld [vmem:[#allocation2 + $0x68] sm:$0xff]  ;;  %v766_v39 = vadd.f32 %v2106_v26, %v746_v35 }
 0x18b   : > { %903 = vmatpush.bf16.xpose.msra.mxu0 %v897_v53  ;;  %1331 = vmatpush.bf16.xpose.msra.mxu1 %v897_v53  ;;  %v762_v30 = vadd.f32 %v2106_v26, %v742_v28  ;;  %v739_v37 = vld [vmem:[#allocation2] sm:$0xff]  ;;  %v770_v40 = vadd.f32 %v2106_v26, %v750_v36  ;;  %v763_v42 = vadd.f32 %v2106_v26, %v743_v38  ;;  %v751_v52 = vld [vmem:[#allocation2 + $0x70] sm:$0xff]  ;;  %v744_v54 = vld [vmem:[#allocation2 + $0x8] sm:$0xff] }
 0x18c   : > { %1332 = vmatpush.bf16.xpose.msra.mxu2 %v897_v53  ;;  %1333 = vmatpush.bf16.xpose.msra.mxu3 %v897_v53  ;;  %v759_v41 = vadd.f32 %v2106_v26, %v739_v37  ;;  %v747_v51 = vld [vmem:[#allocation2 + $0x20] sm:$0xff]  ;;  %v740_v53 = vld [vmem:[#allocation2 + $0x58] sm:$0xff]  ;;  %v771_v56 = vadd.f32 %v2106_v26, %v751_v52  ;;  %v764_v58 = vadd.f32 %v2106_v26, %v744_v54  ;;  %v748_v3 = vld [vmem:[#allocation2 + $0x10] sm:$0xff] }
 0x18d   : > { %v752_v4 = vld [vmem:[#allocation2 + $0x78] sm:$0xff]  ;;  %v745_v6 = vld [vmem:[#allocation2 + $0x48] sm:$0xff]  ;;  %v768_v7 = vadd.f32 %v2106_v26, %v748_v3 }
 0x18e   : > { %v741_v5 = vld [vmem:[#allocation2 + $0x18] sm:$0xff]  ;;  %v772_v8 = vadd.f32 %v2106_v26, %v752_v4  ;;  %v753_v20 = vld [vmem:[#allocation2 + $0x28] sm:$0xff] }
 0x18f   : > { %v761_v9 = vadd.f32 %v2106_v26, %v741_v5  ;;  %v749_v19 = vld [vmem:[#allocation2 + $0x38] sm:$0xff] }
 0x190   : > { %v769_v21 = vadd.f32 %v2106_v26, %v749_v19 }
 0x193   : > { %904 = vmatpush.bf16.xpose.msra.mxu0 %v894_v55  ;;  %1334 = vmatpush.bf16.xpose.msra.mxu1 %v894_v55 }
 0x194   : > { %1335 = vmatpush.bf16.xpose.msra.mxu2 %v894_v55  ;;  %1336 = vmatpush.bf16.xpose.msra.mxu3 %v894_v55  ;;  %v767_v55 = vadd.f32 %v2106_v26, %v747_v51 }
 0x19b   : > { %905 = vmatpush.bf16.xpose.msra.mxu0 %v891_v57  ;;  %1337 = vmatpush.bf16.xpose.msra.mxu1 %v891_v57 }
 0x19c   : > { %1338 = vmatpush.bf16.xpose.msra.mxu2 %v891_v57  ;;  %1339 = vmatpush.bf16.xpose.msra.mxu3 %v891_v57  ;;  %v760_v57 = vadd.f32 %v2106_v26, %v740_v53 }
 0x1a3   : > { %906 = vmatpush.bf16.xpose.msra.mxu0 %v888_v59  ;;  %1340 = vmatpush.bf16.xpose.msra.mxu1 %v888_v59 }
 0x1a4   : > { %1341 = vmatpush.bf16.xpose.msra.mxu2 %v888_v59  ;;  %1342 = vmatpush.bf16.xpose.msra.mxu3 %v888_v59 }
 0x1ab   : > { %907 = vmatpush.bf16.xpose.msra.mxu0 %v885_v61  ;;  %1343 = vmatpush.bf16.xpose.msra.mxu1 %v885_v61 }
 0x1ac   : > { %1344 = vmatpush.bf16.xpose.msra.mxu2 %v885_v61  ;;  %1345 = vmatpush.bf16.xpose.msra.mxu3 %v885_v61 }
 0x1b3   : > { %908 = vmatpush.bf16.xpose.msra.mxu0 %v882_v63  ;;  %1346 = vmatpush.bf16.xpose.msra.mxu1 %v882_v63 }
 0x1b4   : > { %1347 = vmatpush.bf16.xpose.msra.mxu2 %v882_v63  ;;  %1348 = vmatpush.bf16.xpose.msra.mxu3 %v882_v63 }
 0x1bb   : > { %909 = vmatpush.bf16.xpose.msra.mxu0 %v879_v1  ;;  %1349 = vmatpush.bf16.xpose.msra.mxu1 %v879_v1 }
 0x1bc   : > { %1350 = vmatpush.bf16.xpose.msra.mxu2 %v879_v1  ;;  %1351 = vmatpush.bf16.xpose.msra.mxu3 %v879_v1 }
 0x1c2   : > { %1270 = vmatmul.msk.bf16.vlgmr.msra.gmra.mxu0 %vm717_vm1, %v790_v10  ;;  %1272 = vmatmul.msk.bf16.vlgmr.msra.gmra.mxu1 %vm717_vm1, %v792_v11  ;;  %v765_v10 = vadd.f32 %v2106_v26, %v745_v6 }
 0x1c3   : > { %1274 = vmatmul.msk.bf16.vlgmr.msra.gmra.mxu2 %vm717_vm1, %v794_v12  ;;  %1276 = vmatmul.msk.bf16.vlgmr.msra.gmra.mxu3 %vm717_vm1, %v796_v13 }
 0x1d2   : > { %1271 = vmatmul.msk.bf16.gmra.mxu0 %vm717_vm1, %v791_v22  ;;  %1273 = vmatmul.msk.bf16.gmra.mxu1 %vm717_vm1, %v793_v23  ;;  %v773_v22 = vadd.f32 %v2106_v26, %v753_v20 }
 0x1d3   : > { %1275 = vmatmul.msk.bf16.gmra.mxu2 %vm717_vm1, %v795_v24  ;;  %1277 = vmatmul.msk.bf16.gmra.mxu3 %vm717_vm1, %v797_v25 }
 0x23f   : > { %v911_v31 = vpop.f32.mrf.mxu0  ;;  %v921_v32 = vpop.f32.mrf.mxu1 }
 0x240   : > { %v951_v33 = vadd.f32 %v911_v31, %v758_v29  ;;  %v955_v34 = vadd.f32 %v921_v32, %v762_v30 }
 0x242   : > { %967 = vst [vmem:[%s2024_s30] sm:$0xff] %v951_v33 }
 0x243   : > { %971 = vst [vmem:[%s2024_s30 + $0x20] sm:$0xff] %v955_v34 }
 0x246   : > { %v931_v43 = vpop.f32.mrf.mxu2  ;;  %v941_v44 = vpop.f32.mrf.mxu3 }
 0x247   : > { %v959_v45 = vadd.f32 %v931_v43, %v766_v39  ;;  %v963_v46 = vadd.f32 %v941_v44, %v770_v40  ;;  %v913_v47 = vpop.f32.mrf.mxu0  ;;  %v923_v48 = vpop.f32.mrf.mxu1 }
 0x248   : > { %v952_v49 = vadd.f32 %v913_v47, %v759_v41  ;;  %v956_v50 = vadd.f32 %v923_v48, %v763_v42 }
 0x249   : > { %975 = vst [vmem:[%s2024_s30 + $0x40] sm:$0xff] %v959_v45 }
 0x24a   : > { %979 = vst [vmem:[%s2024_s30 + $0x60] sm:$0xff] %v963_v46 }
 0x24b   : > { %968 = vst [vmem:[%s2024_s30 + $0x8] sm:$0xff] %v952_v49 }
 0x24c   : > { %972 = vst [vmem:[%s2024_s30 + $0x28] sm:$0xff] %v956_v50 }
 0x24e   : > { %v933_v59 = vpop.f32.mrf.mxu2  ;;  %v943_v60 = vpop.f32.mrf.mxu3 }
 0x24f   : > { %v960_v61 = vadd.f32 %v933_v59, %v767_v55  ;;  %v964_v62 = vadd.f32 %v943_v60, %v771_v56  ;;  %v916_v63 = vpop.f32.mrf.mxu0  ;;  %v926_v0 = vpop.f32.mrf.mxu1 }
 0x250   : > { %v953_v1 = vadd.f32 %v916_v63, %v760_v57  ;;  %v957_v2 = vadd.f32 %v926_v0, %v764_v58 }
 0x251   : > { %976 = vst [vmem:[%s2024_s30 + $0x48] sm:$0xff] %v960_v61 }
 0x252   : > { %980 = vst [vmem:[%s2024_s30 + $0x68] sm:$0xff] %v964_v62 }
 0x253   : > { %969 = vst [vmem:[%s2024_s30 + $0x10] sm:$0xff] %v953_v1 }
 0x254   : > { %973 = vst [vmem:[%s2024_s30 + $0x30] sm:$0xff] %v957_v2 }
 0x256   : > { %v936_v11 = vpop.f32.mrf.mxu2  ;;  %v946_v12 = vpop.f32.mrf.mxu3 }
 0x257   : > { %v961_v13 = vadd.f32 %v936_v11, %v768_v7  ;;  %v965_v14 = vadd.f32 %v946_v12, %v772_v8  ;;  %v918_v15 = vpop.f32.mrf.mxu0  ;;  %v928_v16 = vpop.f32.mrf.mxu1 }
 0x258   : > { %v954_v17 = vadd.f32 %v918_v15, %v761_v9  ;;  %v958_v18 = vadd.f32 %v928_v16, %v765_v10 }
 0x259   : > { %977 = vst [vmem:[%s2024_s30 + $0x50] sm:$0xff] %v961_v13 }
 0x25a   : > { %981 = vst [vmem:[%s2024_s30 + $0x70] sm:$0xff] %v965_v14 }
 0x25b   : > { %970 = vst [vmem:[%s2024_s30 + $0x18] sm:$0xff] %v954_v17 }
 0x25c   : > { %974 = vst [vmem:[%s2024_s30 + $0x38] sm:$0xff] %v958_v18 }
 0x25e   : > { %v938_v23 = vpop.f32.mrf.mxu2  ;;  %v948_v24 = vpop.f32.mrf.mxu3 }
 0x25f   : > { %v962_v25 = vadd.f32 %v938_v23, %v769_v21  ;;  %v966_v27 = vadd.f32 %v948_v24, %v773_v22 }
 0x261   : > { %978 = vst [vmem:[%s2024_s30 + $0x58] sm:$0xff] %v962_v25 }
 0x262   : > { %982 = vst [vmem:[%s2024_s30 + $0x78] sm:$0xff] %v966_v27 }
 0x263 PF: > { %s2281_s2 = sld [smem:[#allocation16_spill]]  ;;  %s998_s21 = sshll.u32 %s2024_s30, 4  ;;  %s999_s21 = int_to_ptr.vmem [resolvable:$true] %s998_s21 }
 0x264   : > { %s2282_s14 = sld [smem:[#allocation15_spill]]  ;;  %s2285_s11 = sand.u32 1, %s1677_s19  }
 0x265   : > { %s2284_s4 = sld [smem:[#allocation31_spill]]  ;;  %s984_s29 = scalar_lea.sflag [#allocation6], %s2285_s11 }
 0x269   : > { %s1310_s5 = sshll.u32 %s2281_s2, 5 }
 0x26a   : > { %s995_s12 = sadd.s32 %s2282_s14, %s1310_s5 }
 0x26b   : > { %s1281_s28 = sshll.u32 %s995_s12, 3  ;;  %s1587_s30 = scalar_lea.hbm %s2284_s4, 512 }
 0x26c   : > { %s997_s10 = scalar_lea.hbm %s2284_s4, %s1281_s28 }
 0x26d   : > { %s1000_s7 = sshll.u32 %s997_s10, 4  ;;  %s1001_s7 = int_to_ptr.hbm [resolvable:$true] %s1000_s7 }
 0x26e   : > { %s1581_s16 = sshra.s32 %s1001_s7, 4  ;;  %s1582_s16 = int_to_ptr.hbm [resolvable:$true] %s1581_s16 }
 0x26f   : > { %s1583_s17 = scalar_lea.hbm %s1582_s16, 128  ;;  %p1588_p13 = scmp.lt.s32.totalorder %s1582_s16, %s2284_s4 }
 0x270   : > { %p1584_p2 = scmp.ne.s32.totalorder %s1582_s16, %s1583_s17  ;;  %p1589_p1 = scmp.lt.s32.totalorder %s1587_s30, %s1583_s17 }
 0x272   : > { %p1585_p10 = pnand %p1584_p2, %p1945_p4  ;;  %p1590_p3 = por %p1589_p1, %p1588_p13 }
 0x274   : > { %p1586_p11 = pneg %p1585_p10 }
 0x276   : > { %p1591_p0 = pnand %p1590_p3, %p1586_p11 }
 0x278   : > { %1594 = shalt.err (!%p1591_p0)
}
 0x279   : > { %s1739_s26 = smov 128   ;;  %s1740_s2 = smov 256  }
 0x27a   : > { %s1741_s14 = smov 8  }
 0x27b   : > { %1356 = dma.vmem_to_hbm [thread:$0]  (%p1945_p4), %s999_s21, 2048, %s1001_s7, %s984_s29, %s1739_s26, %s1740_s2, %s1741_s14  }
 0x27c PF: > { %p1370_p7 = scmp.ge.s32.totalorder %s1733_s8, 2  ;;  %s1015_s5 = sand.u32 1, %s1673_s18  }
 0x27d   : > { %s1016_s12 = scalar_lea.sflag [#allocation6], %s1015_s5 }
 0x27e   : > { %p1366_p8 = pnand %p1370_p7, %p1968_p6 }
 0x280   : > { %p1367_p12 = pneg %p1366_p8 }
 0x282   : > { %1668 = dma.done.wait (%p1367_p12), %s1016_s12, 2048  }
 0x283   : > { %1670 = vsyncadd (%p1367_p12), %s1016_s12, 4294965248  ;;  %s24_s8 = sadd.s32 1, %s1733_s8   ;;  %s2287_s24 = sld [smem:[#allocation24_spill]] }
 0x284   : > { %p2163_p5 = scmp.ge.s32.totalorder %s24_s8, 10   ;;  %s2288_s9 = sld [smem:[#allocation13_spill]] }
 0x285   : > { %s2289_s26 = sld [smem:[#allocation25_spill]]  ;;  %s2296_s18 = smov %s1677_s19 }
 0x286   : > { %s2290_s15 = sld [smem:[#allocation17_spill]]  ;;  %s2298_s19 = smov %s1681_s20 }
 0x287   : > { %s2291_s3 = sld [smem:[#allocation18_spill]]  ;;  %s2299_s20 = smov %s1966_s27 }
 0x288   : > { %s2292_s29 = sld [smem:[#allocation19_spill]]  ;;  %s2300_s21 = smov %s1689_s22 }
 0x289   : > { %s2293_s30 = sld [smem:[#allocation20_spill]]  ;;  %s2301_s22 = smov %s1693_s23 }
 0x28a   : > { %s2294_s6 = sld [smem:[#allocation21_spill]]  ;;  %s2302_s23 = smov %s2287_s24 }
 0x28b   : > { %s2295_s7 = sld [smem:[#allocation23_spill]]  ;;  %s2303_s24 = smov %s1701_s25 }
 0x28c   : > { %s2304_s25 = smov %s2288_s9  ;;  %s2305_s27 = smov %s2290_s15 }
 0x28d   : > { %s2306_s28 = smov %s2291_s3  ;;  %23 = sbr.rel (!%p2163_p5) target bundleno = 20 (0x14), region = 115 }
 0x292   :  { %1022 = vsyncpa [#allocation5], 1 }
 0x293   :  { %1024 = vsyncpa [#allocation5 + $0x1], 1 }
 0x294   :  { %1025 = vsyncpa [#allocation8], 1 }
 0x295   :  { %1027 = vsyncpa [#allocation8 + $0x1], 1 }
 0x296   :  { %1028 = vsyncpa [#allocation6], 1 }
 0x297   :  { %1030 = vsyncpa [#allocation6 + $0x1], 1 }

</bundles_post_ra>
